<compile_context>
chip_gen: v7x
topology: tpu7x:2x2x1
jax: 0.10.0
libtpu: 0.0.40
codegen_flags: <defaults>
</compile_context>

<pallas_src>
from functools import partial

import jax
import jax.numpy as jnp
from jax.experimental import pallas as pl
from jax.experimental.pallas import tpu as pltpu


def _round_up(x, m):
    return ((x + m - 1) // m) * m


# --------------------------------------------------------------------------- #
# Kernel: fused dynamics-model forward + per-block squared-error partials.
# Layout: batch on lanes, joints on sublanes.
#   x_ref   : (3*NV_pad, TB)   rows [vd^T ; v^T ; q^T]           (pipelined)
#   tgt_ref : (NV_pad, TB)     tau_cmd_target^T                  (pipelined)
#   w_ref   : (NV_pad, 2*NV_pad) fused [M+diag(rotor) | C-diag(viscous)] (resident)
#   p_ref   : (2*NV_pad, 128)  rows [g ; coulomb]                (resident, lane-bcast)
#   tau_ref : (NV_pad, TB)     tau_cmd_est^T                     (optional output)
#   sse_ref : (8, TB)          per-block partial SSE             (output, parallel)
# --------------------------------------------------------------------------- #
def _traj_kernel(x_ref, tgt_ref, w_ref, p_ref, *out_refs, nv_pad, emit_tau):
    f32 = jnp.float32
    if emit_tau:
        tau_ref, sse_ref = out_refs
    else:
        (sse_ref,) = out_refs

    x = x_ref[...].astype(f32)                       # (3*NV_pad, TB)
    vd_v = x[:2 * nv_pad, :]                         # [vd ; v] fused matmul operand
    v = x[nv_pad:2 * nv_pad, :]
    q = x[2 * nv_pad:, :]

    p = p_ref[...]                                   # (2*NV_pad, 128)
    g = p[:nv_pad, 0:1]                              # (NV_pad, 1) -> lane broadcast
    coul = p[nv_pad:, 0:1]

    # Fused nominal inverse dynamics + rotor inertia + viscous friction:
    #   [M + diag(rotor) | C - diag(viscous)] @ [vd ; v]   (single MXU push)
    # TODO(synk): true Drake inverse dynamics (plant-specific RNEA) is not
    # expressible as a Pallas kernel; surrogate M vd + C v + g sin(q) used.
    tau = jnp.dot(w_ref[...], vd_v, preferred_element_type=f32)
    tau = tau + jnp.sin(q) * g - coul * jnp.tanh(100.0 * v)   # smoothed Coulomb friction

    if emit_tau:
        tau_ref[...] = tau.astype(tau_ref.dtype)

    # Fused MSE numerator: per-block partial SSE (no resident accumulator ->
    # grid axis stays "parallel"); padded joint rows / batch lanes are exact 0.
    err = tau - tgt_ref[...].astype(f32)
    sq = err * err
    if nv_pad == 8:
        partial = sq
    else:
        partial = jnp.sum(sq.reshape(nv_pad // 8, 8, sq.shape[-1]), axis=0)
    sse_ref[...] = partial


# --------------------------------------------------------------------------- #
# Wrapper: layout plumbing (pad/transpose/pack) + pallas_call.
# --------------------------------------------------------------------------- #
_VMEM_TILE_BUDGET = 14 * 1024 * 1024   # double-buffered tile budget; fits v5e's 16 MiB


@partial(jax.jit, static_argnames=("tb_cap", "emit_tau", "stream_dtype"))
def _forward_and_sse(q, v, vd, tau_target, params, *, tb_cap=32768,
                     emit_tau=True, stream_dtype=jnp.float32):
    f32 = jnp.float32
    B, NV = q.shape
    nv_pad = _round_up(NV, 8)                        # sublane alignment

    # ---- lane-tile (batch) sizing: as big as the VMEM budget allows ---------
    stream_bytes = jnp.dtype(stream_dtype).itemsize
    bytes_per_lane = 2 * (4 * nv_pad) * stream_bytes + 2 * 8 * 4   # x+tgt, sse (dbl-buf)
    if emit_tau:
        bytes_per_lane += 2 * nv_pad * 4
    vmem_cap_lanes = max(128, (_VMEM_TILE_BUDGET // bytes_per_lane) // 128 * 128)
    b128 = _round_up(max(B, 1), 128)
    tb_max = max(128, min(_round_up(tb_cap, 128), vmem_cap_lanes))
    num_blocks = -(-b128 // tb_max)                  # ceil div
    tb = _round_up(-(-max(B, 1) // num_blocks), 128)
    b_pad = num_blocks * tb

    # ---- layout plumbing: joints on sublanes, batch on lanes ----------------
    # One stack + one pad + one transpose (XLA fuses) instead of 3 scatter passes.
    # TODO(synk): if the caller stores trajectories joint-major (NV, B) this
    # transpose pass disappears entirely.
    x3 = jnp.stack([vd, v, q], axis=0).astype(stream_dtype)        # (3, B, NV)
    x3 = jnp.pad(x3, ((0, 0), (0, b_pad - B), (0, nv_pad - NV)))
    x = jnp.transpose(x3, (0, 2, 1)).reshape(3 * nv_pad, b_pad)    # (3*nv_pad, b_pad)

    tgt = jnp.pad(tau_target.astype(stream_dtype),
                  ((0, b_pad - B), (0, nv_pad - NV))).T            # (nv_pad, b_pad)

    # Fused weight [M + diag(rotor) | C - diag(viscous)]; rows/cols beyond NV
    # stay zero so padded joints/lanes contribute exactly 0 to tau and the SSE.
    rotor = jnp.exp(params["log_rotor"][0]).astype(f32)            # exp hoisted here
    m_eff = params["M"].astype(f32) + jnp.diag(rotor)
    c_eff = params["C"].astype(f32) - jnp.diag(params["viscous"][0].astype(f32))
    w = jnp.zeros((nv_pad, 2 * nv_pad), f32)
    w = w.at[:NV, :NV].set(m_eff)
    w = w.at[:NV, nv_pad:nv_pad + NV].set(c_eff)

    # Per-joint constants at fixed 128-lane width (broadcast in-kernel).
    pblk = jnp.zeros((2 * nv_pad, 128), f32)
    pblk = pblk.at[:NV, :].set(params["g"][0].astype(f32)[:, None])
    pblk = pblk.at[nv_pad:nv_pad + NV, :].set(params["coulomb"][0].astype(f32)[:, None])

    kernel = partial(_traj_kernel, nv_pad=nv_pad, emit_tau=emit_tau)

    out_shape = [jax.ShapeDtypeStruct((8 * num_blocks, tb), f32)]          # partial SSE
    out_specs = [pl.BlockSpec((8, tb), lambda i: (i, 0))]
    if emit_tau:
        out_shape = [jax.ShapeDtypeStruct((nv_pad, b_pad), f32)] + out_shape
        out_specs = [pl.BlockSpec((nv_pad, tb), lambda i: (0, i))] + out_specs

    cost = pl.CostEstimate(
        flops=int(2 * b_pad * nv_pad * (2 * nv_pad) + 8 * b_pad * nv_pad),
        transcendentals=int(2 * b_pad * nv_pad),
        bytes_accessed=int(x.size * stream_bytes + tgt.size * stream_bytes
                           + w.size * 4 + pblk.size * 4
                           + (nv_pad * b_pad * 4 if emit_tau else 0)
                           + 8 * num_blocks * tb * 4),
    )

    outs = pl.pallas_call(
        kernel,
        out_shape=tuple(out_shape),
        grid=(num_blocks,),
        in_specs=[
            pl.BlockSpec((3 * nv_pad, tb), lambda i: (0, i)),      # activations (pipelined)
            pl.BlockSpec((nv_pad, tb), lambda i: (0, i)),          # target (pipelined)
            pl.BlockSpec((nv_pad, 2 * nv_pad), lambda i: (0, 0)),  # fused weights (resident)
            pl.BlockSpec((2 * nv_pad, 128), lambda i: (0, 0)),     # per-joint consts (resident)
        ],
        out_specs=tuple(out_specs),
        compiler_params=pltpu.CompilerParams(
            dimension_semantics=("parallel",),       # no resident accumulator -> megacore OK
            vmem_limit_bytes=32 * 1024 * 1024),
        cost_estimate=cost,
    )(x, tgt, w, pblk)

    if emit_tau:
        tau_t, sse_partials = outs
        tau_est = tau_t[:NV, :B].T                   # back to (B, NV)
    else:
        (sse_partials,) = outs
        tau_est = None
    sse = jnp.sum(sse_partials)                      # padded rows/lanes contribute 0
    return tau_est, sse


# --------------------------------------------------------------------------- #
# Regularizer: InertialEntropicDivergence surrogate (tiny per-body scalar work).
# --------------------------------------------------------------------------- #
def _pseudo_inertia(m, c, rot_inertia):
    sigma = 0.5 * jnp.trace(rot_inertia) * jnp.eye(3, dtype=rot_inertia.dtype) - rot_inertia
    h = m * c
    top = jnp.concatenate([sigma, h[:, None]], axis=1)
    bot = jnp.concatenate([h[None, :], jnp.reshape(m, (1, 1))], axis=1)
    return jnp.concatenate([top, bot], axis=0)       # (4, 4) SPD pseudo-inertia


def inertial_entropic_divergence(masses, coms, rot_inertias,
                                 masses0, coms0, rot_inertias0):
    # TODO(synk): Drake's exact InertialEntropicDivergence is unavailable; the
    # standard pseudo-inertia log-det (entropic/Bregman) divergence is used as a
    # surrogate, in plain JAX (a few 4x4s per body -- no Pallas benefit).
    def per_body(m, c, rI, m0, c0, rI0):
        J = _pseudo_inertia(m, c, rI)
        J0 = _pseudo_inertia(m0, c0, rI0)
        _, ld = jnp.linalg.slogdet(J)
        _, ld0 = jnp.linalg.slogdet(J0)
        return ld0 - ld + jnp.trace(jnp.linalg.solve(J0, J)) - 4.0

    return jax.vmap(per_body)(masses, coms, rot_inertias,
                              masses0, coms0, rot_inertias0)


def dynamics_model_trajectory_loss(q, v, vd, tau_cmd_target, params, gamma, *,
                                   return_tau_est=True, tb_cap=32768,
                                   stream_dtype=jnp.float32):
    """Mirrors DynamicsModelTrajectoryLoss.forward; optionally returns tau_cmd_est."""
    tau_cmd_est, sse = _forward_and_sse(
        q, v, vd, tau_cmd_target, params,
        tb_cap=tb_cap, emit_tau=return_tau_est, stream_dtype=stream_dtype)
    tau_loss = sse / (q.shape[0] * q.shape[1])       # == mse_loss(target, est)
    div = inertial_entropic_divergence(
        params["masses"], params["coms"], params["rot_inertias"],
        params["masses0"], params["coms0"], params["rot_inertias0"])
    regularizer_loss = gamma * jnp.mean(div)
    loss = tau_loss + regularizer_loss
    # JAX scalars (jit-safe, no device->host sync), unlike torch .item().
    loss_dict = {"tau": tau_loss, "regularizer": regularizer_loss}
    return loss, loss_dict, tau_cmd_est


# --------------------------------------------------------------------------- #
# Deterministic synthetic parameters + pure-JAX reference.
# --------------------------------------------------------------------------- #
def make_params(num_v, num_bodies, key):
    kM, kC, kg, kb, kf, km, kc, ki = jax.random.split(key, 8)
    A = jax.random.normal(kM, (num_v, num_v), jnp.float32)
    M = A @ A.T / num_v + 0.5 * jnp.eye(num_v, dtype=jnp.float32)   # SPD mass matrix
    C = 0.1 * jax.random.normal(kC, (num_v, num_v), jnp.float32)    # Coriolis-like
    g = jax.random.normal(kg, (1, num_v), jnp.float32)              # gravity scale
    log_rotor = jnp.full((1, num_v), jnp.log(1e-8), jnp.float32)
    viscous = 0.1 + 0.05 * jax.random.uniform(kb, (1, num_v), jnp.float32)
    coulomb = 0.2 + 0.05 * jax.random.uniform(kf, (1, num_v), jnp.float32)

    # nominal inertial params (captured by the regularizer at __init__)
    masses0 = 1.0 + jax.random.uniform(km, (num_bodies,), jnp.float32)
    coms0 = 0.05 * jax.random.normal(kc, (num_bodies, 3), jnp.float32)
    S = 0.3 * jax.random.normal(ki, (num_bodies, 3, 3), jnp.float32)
    sigma0 = S @ jnp.swapaxes(S, 1, 2) + 0.2 * jnp.eye(3, dtype=jnp.float32)
    rot0 = (jnp.trace(sigma0, axis1=1, axis2=2)[:, None, None]
            * jnp.eye(3, dtype=jnp.float32) - sigma0)
    # current model inertial params (slightly perturbed, as after some training)
    masses, coms, rot = masses0 * 1.03, coms0 + 0.002, rot0 * 1.02

    return dict(M=M, C=C, g=g, log_rotor=log_rotor, viscous=viscous, coulomb=coulomb,
                masses=masses, coms=coms, rot_inertias=rot,
                masses0=masses0, coms0=coms0, rot_inertias0=rot0)


def dynamics_model_ref(q, v, vd, p):
    tau_nom = vd @ p["M"].T + v @ p["C"].T + jnp.sin(q) * p["g"]
    tau_id = tau_nom + jnp.exp(p["log_rotor"]) * vd
    tau_fric = p["viscous"] * v + p["coulomb"] * jnp.tanh(100.0 * v)
    return tau_id - tau_fric


if __name__ == "__main__":
    B, NV, NB = 300, 7, 7          # small batch of 7-DOF joint states (Panda arm)
    gamma = 1e-3
    key = jax.random.PRNGKey(0)
    kq, kv, kvd, kn, kp = jax.random.split(key, 5)
    q = jax.random.normal(kq, (B, NV), jnp.float32)
    v = jax.random.normal(kv, (B, NV), jnp.float32)
    vd = jax.random.normal(kvd, (B, NV), jnp.float32)
    params = make_params(NV, NB, kp)

    tau_ref = dynamics_model_ref(q, v, vd, params)
    tau_target = tau_ref + 0.05 * jax.random.normal(kn, (B, NV), jnp.float32)

    loss, loss_dict, tau_est = dynamics_model_trajectory_loss(
        q, v, vd, tau_target, params, gamma)
    loss = jax.block_until_ready(loss)
    tau_est = jax.block_until_ready(tau_est)

    # loss-only (no tau_cmd_est writeback) training path
    loss_only, _, tau_none = dynamics_model_trajectory_loss(
        q, v, vd, tau_target, params, gamma, return_tau_est=False)
    loss_only = jax.block_until_ready(loss_only)

    # ---- correctness checks against the pure-JAX reference ------------------
    tau_loss_ref = jnp.mean((tau_target - tau_ref) ** 2)
    reg_ref = gamma * jnp.mean(inertial_entropic_divergence(
        params["masses"], params["coms"], params["rot_inertias"],
        params["masses0"], params["coms0"], params["rot_inertias0"]))
    loss_ref = tau_loss_ref + reg_ref

    assert tau_est.shape == (B, NV) and tau_est.dtype == jnp.float32
    assert jnp.allclose(tau_est, tau_ref, atol=1e-4, rtol=1e-4)
    assert jnp.allclose(loss, loss_ref, atol=1e-5, rtol=1e-4)
    assert tau_none is None
    assert jnp.allclose(loss_only, loss_ref, atol=1e-5, rtol=1e-4)
    assert bool(jnp.isfinite(loss_dict["tau"])) and bool(jnp.isfinite(loss_dict["regularizer"]))
    print("KERNEL_OK")
</pallas_src>

<mosaic_0001>
module attributes {stable_mosaic.version = 11 : i64} {
  func.func @_traj_kernel(%arg0: i32, %arg1: memref<24x384xf32, #tpu.memory_space<vmem>>, %arg2: memref<8x384xf32, #tpu.memory_space<vmem>>, %arg3: memref<8x16xf32, #tpu.memory_space<vmem>>, %arg4: memref<16x128xf32, #tpu.memory_space<vmem>>, %arg5: memref<8x384xf32, #tpu.memory_space<vmem>>, %arg6: memref<8x384xf32, #tpu.memory_space<vmem>>) attributes {dimension_semantics = [#tpu.dimension_semantics<parallel>], iteration_bounds = array<i64: 1>, scalar_prefetch = 0 : i64, scratch_operands = 0 : i64, tpu.core_type = #tpu.core_type<tc>, window_params = [{transform_indices = @transform_0, window_bounds = array<i64: 24, 384>}, {transform_indices = @transform_1, window_bounds = array<i64: 8, 384>}, {pipeline_mode = #tpu.pipeline_mode<synchronous>, transform_indices = @transform_2, window_bounds = array<i64: 8, 16>}, {pipeline_mode = #tpu.pipeline_mode<synchronous>, transform_indices = @transform_3, window_bounds = array<i64: 16, 128>}, {transform_indices = @transform_4, window_bounds = array<i64: 8, 384>}, {transform_indices = @transform_5, window_bounds = array<i64: 8, 384>}]} {
    %c0 = arith.constant 0 : index
    %c0_0 = arith.constant 0 : index
    %0 = vector.load %arg1[%c0, %c0_0] : memref<24x384xf32, #tpu.memory_space<vmem>>, vector<24x384xf32>
    %1 = vector.extract_strided_slice %0 {offsets = [0, 0], sizes = [16, 384], strides = [1, 1]} : vector<24x384xf32> to vector<16x384xf32>
    %2 = vector.extract_strided_slice %0 {offsets = [8, 0], sizes = [8, 384], strides = [1, 1]} : vector<24x384xf32> to vector<8x384xf32>
    %3 = vector.extract_strided_slice %0 {offsets = [16, 0], sizes = [8, 384], strides = [1, 1]} : vector<24x384xf32> to vector<8x384xf32>
    %c0_1 = arith.constant 0 : index
    %c0_2 = arith.constant 0 : index
    %4 = vector.load %arg4[%c0_1, %c0_2] : memref<16x128xf32, #tpu.memory_space<vmem>>, vector<16x128xf32>
    %5 = vector.extract_strided_slice %4 {offsets = [0, 0], sizes = [8, 1], strides = [1, 1]} : vector<16x128xf32> to vector<8x1xf32>
    %6 = vector.extract_strided_slice %4 {offsets = [8, 0], sizes = [8, 1], strides = [1, 1]} : vector<16x128xf32> to vector<8x1xf32>
    %c0_3 = arith.constant 0 : index
    %c0_4 = arith.constant 0 : index
    %7 = vector.load %arg3[%c0_3, %c0_4] : memref<8x16xf32, #tpu.memory_space<vmem>>, vector<8x16xf32>
    %cst = arith.constant dense<0.000000e+00> : vector<8x384xf32>
    %8 = tpu.matmul %7, %1, %cst {dimension_numbers = #tpu.dot_dimension_numbers<[1], [0], [0], [1], [0, 0, 1, 1], [], []>} : vector<8x16xf32>, vector<16x384xf32>, vector<8x384xf32> -> vector<8x384xf32>
    %9 = math.sin %3 : vector<8x384xf32>
    %10 = vector.broadcast %5 : vector<8x1xf32> to vector<8x384xf32>
    %11 = arith.mulf %9, %10 : vector<8x384xf32>
    %12 = arith.addf %8, %11 : vector<8x384xf32>
    %cst_5 = arith.constant 1.000000e+02 : f32
    %13 = vector.broadcast %cst_5 : f32 to vector<8x384xf32>
    %14 = arith.mulf %13, %2 : vector<8x384xf32>
    %15 = math.tanh %14 : vector<8x384xf32>
    %16 = vector.broadcast %6 : vector<8x1xf32> to vector<8x384xf32>
    %17 = arith.mulf %16, %15 : vector<8x384xf32>
    %18 = arith.subf %12, %17 : vector<8x384xf32>
    %c0_6 = arith.constant 0 : index
    %c0_7 = arith.constant 0 : index
    %19 = vector.load %arg5[%c0_6, %c0_7] : memref<8x384xf32, #tpu.memory_space<vmem>>, vector<8x384xf32>
    tpu.vector_store %arg5[%c0_6, %c0_7], %18 {strides = array<i32>} : memref<8x384xf32, #tpu.memory_space<vmem>>, vector<8x384xf32>,
    %c0_8 = arith.constant 0 : index
    %c0_9 = arith.constant 0 : index
    %20 = vector.load %arg2[%c0_8, %c0_9] : memref<8x384xf32, #tpu.memory_space<vmem>>, vector<8x384xf32>
    %21 = arith.subf %18, %20 : vector<8x384xf32>
    %22 = arith.mulf %21, %21 : vector<8x384xf32>
    %c0_10 = arith.constant 0 : index
    %c0_11 = arith.constant 0 : index
    %23 = vector.load %arg6[%c0_10, %c0_11] : memref<8x384xf32, #tpu.memory_space<vmem>>, vector<8x384xf32>
    tpu.vector_store %arg6[%c0_10, %c0_11], %22 {strides = array<i32>} : memref<8x384xf32, #tpu.memory_space<vmem>>, vector<8x384xf32>,
    return
  }
  func.func @transform_0(%arg0: i32) -> (i32, i32) {
    %c0_i32 = arith.constant 0 : i32
    %c0_i32_0 = arith.constant 0 : i32
    return %c0_i32, %arg0 : i32, i32
  }
  func.func @transform_1(%arg0: i32) -> (i32, i32) {
    %c0_i32 = arith.constant 0 : i32
    %c0_i32_0 = arith.constant 0 : i32
    return %c0_i32, %arg0 : i32, i32
  }
  func.func @transform_2(%arg0: i32) -> (i32, i32) {
    %c0_i32 = arith.constant 0 : i32
    %c0_i32_0 = arith.constant 0 : i32
    %c0_i32_1 = arith.constant 0 : i32
    return %c0_i32, %c0_i32_0 : i32, i32
  }
  func.func @transform_3(%arg0: i32) -> (i32, i32) {
    %c0_i32 = arith.constant 0 : i32
    %c0_i32_0 = arith.constant 0 : i32
    %c0_i32_1 = arith.constant 0 : i32
    return %c0_i32, %c0_i32_0 : i32, i32
  }
  func.func @transform_4(%arg0: i32) -> (i32, i32) {
    %c0_i32 = arith.constant 0 : i32
    %c0_i32_0 = arith.constant 0 : i32
    return %c0_i32, %arg0 : i32, i32
  }
  func.func @transform_5(%arg0: i32) -> (i32, i32) {
    %c0_i32 = arith.constant 0 : i32
    %c0_i32_0 = arith.constant 0 : i32
    return %arg0, %c0_i32 : i32, i32
  }
}

</mosaic_0001>

<bundles_post_ra>
// kernel: _forward_and_sse.1
= control target key start
LH: loop header
LB: loop body
LE: loop exit
PB: predicated region body
PF: predicated region fallthrough
CT: control target
= control target key end

     0   :  { %v608_v0 = vmov 0.0|0.0   ;;  %vm609_vm0 = vmmov 0   ;;  %v610_v4 = vmov 0.0   ;;  %v611_v9 = vmov 0   ;;  %s996_s0 = inlined_call_operand.vmem [shape: f32[24,384], index: 0, kind: input, shape index: {}]   ;;  %s997_s3 = inlined_call_operand.vmem [shape: f32[16,128], index: 3, kind: input, shape index: {}]   ;;  %s998_s2 = inlined_call_operand.vmem [shape: f32[8,16], index: 2, kind: input, shape index: {}]   ;;  %s999_s1 = inlined_call_operand.vmem [shape: f32[8,384], index: 1, kind: input, shape index: {}]   ;;  %s1000_s4 = inlined_call_operand.vmem [shape: f32[8,384], index: 4, kind: output, shape index: {0}]   ;;  %s1001_s5 = inlined_call_operand.vmem [shape: f32[8,384], index: 5, kind: output, shape index: {1}]  }
   0x1   :  { %564 = vmatprep.subr.bf16.mxu1 %v608_v0  ;;  %v20_v1 = vld [vmem:[%s996_s0 + $0x8] sm:$0xff]  ;;  %v654_v2 = vld [vmem:[%s996_s0 + $0x20] sm:$0xff]  ;;  %v21_v3 = vld [vmem:[%s996_s0 + $0x10] sm:$0xff]  ;;  %557 = vmatprep.mubr.msk.f32.mxu1 %vm609_vm0, %v610_v4  ;;  %vm351_vm1 = vcmask 130048   ;;  %v612_v36 = vmov 2102212464  }
   0x2   :  { %v560_v5 = vpack.c.bf16 %v654_v2, %v20_v1  ;;  %v663_v6 = vld [vmem:[%s996_s0 + $0x28] sm:$0xff]  ;;  %v19_v7 = vld [vmem:[%s996_s0] sm:$0xff]  ;;  %v671_v8 = vld [vmem:[%s996_s0 + $0x18] sm:$0xff]  ;;  %419 = vmatprep.mubr.f32.mxu0 %v610_v4  ;;  %589 = vset.pattern.permute.xlu0 %v611_v9  ;;  %v613_v38 = vmov 920167782  }
   0x3   :  { %v565_v10 = vpack.c.bf16 %v663_v6, %v21_v3  ;;  %v562_v11 = vpack.c.bf16 %v671_v8, %v19_v7  ;;  %v28_v12 = vld [vmem:[%s997_s3] sm:$0xff]  ;;  %v29_v14 = vld [vmem:[%s997_s3 + $0x8] sm:$0xff]  ;;  %v693_v18 = vld [vmem:[%s996_s0 + $0x30] sm:$0xff]  ;;  %v614_v42 = vmov 1326507024  }
   0x4   :  { %561 = vmatprep.subr.bf16.mxu0 %v560_v5  ;;  %345 = vperm.xlu0 %589, %v28_v12   ;;  %v30_v13 = vld [vmem:[%s998_s2] sm:$0xff]  ;;  %v34_v20 = vand.u32 2139095040, %v693_v18  ;;  %v699_v21 = vld [vmem:[%s996_s0 + $0x38] sm:$0xff]  ;;  %v615_v46 = vmov 683565275  }
   0x5   :  { %566 = vmatpush3.bf16.msra.mxu1 %v565_v10  ;;  %563 = vmatpush1.bf16.msra.mxu0 %v562_v11  ;;  %v687_v15 = vld [vmem:[%s996_s0 + $0x40] sm:$0xff]  ;;  %v138_v24 = vand.u32 2139095040, %v699_v21  ;;  %v616_v48 = vmov 2475754826   ;;  %v617_v52 = vmov 2131351028  }
   0x6   :  { %v242_v16 = vand.u32 2139095040, %v687_v15  ;;  %v35_v23 = vshrl.u32 %v34_v20, 23  ;;  %v239_v31 = vand.u32 2147483647, %v687_v15  ;;  %v31_v1 = vand.u32 2147483647, %v693_v18 }
   0x7   :  { %v139_v26 = vshrl.u32 %v138_v24, 23 }
   0x8   :  { %558 = vmatmul.mubr.msk.f32.vlgmr.msra.gmra.mrb[0].mxu1 %vm351_vm1, %v30_v13  ;;  %548 = vmatmul.mubr.msk.f32.vlgmr.msra.gmra.mrb[0].mxu0 %vm351_vm1, %v30_v13  ;;  %v243_v17 = vshrl.u32 %v242_v16, 23  ;;  %v536_v25 = vadd.s32 4294967169, %v35_v23  ;;  %v246_v34 = vand.u32 8388607, %v239_v31 }
   0x9   :  { %504 = vperm.xlu0 %589, %v29_v14   ;;  %v540_v29 = vadd.s32 4294967169, %v139_v26 }
   0xa   :  { %v544_v19 = vadd.s32 4294967169, %v243_v17  ;;  %v41_v28 = vadd.s32 1, %v536_v25  ;;  %v247_v45 = vor.u32 8388608, %v246_v34 }
   0xb   :  { %v145_v32 = vadd.s32 1, %v540_v29 }
   0xc   :  { %v249_v22 = vadd.s32 1, %v544_v19  ;;  %vm42_vm3 = vcmp.gt.s32.totalorder %v41_v28, 0  ;;  %v726_v63 = vshll.u32 %v247_v45, 8  ;;  %v38_v19 = vand.u32 8388607, %v31_v1 }
   0xd   :  { %v43_v35 = vsel %vm42_vm3, %v41_v28, 0  ;;  %vm146_vm4 = vcmp.gt.s32.totalorder %v145_v32, 0 }
   0xe   :  { %vm250_vm2 = vcmp.gt.s32.totalorder %v249_v22, 0  ;;  %v45_v44 = vand.u32 31, %v43_v35  ;;  %v147_v50 = vsel %vm146_vm4, %v145_v32, 0  ;;  %v751_v16 = vshrl.u32 %v43_v35, 5 }
   0xf   :  { %v251_v27 = vsel %vm250_vm2, %v249_v22, 0  ;;  %v149_v59 = vand.u32 31, %v147_v50  ;;  %v135_v32 = vand.u32 2147483647, %v699_v21  ;;  %v770_v34 = vshrl.u32 %v147_v50, 5 }
  0x10   :  { %v253_v30 = vand.u32 31, %v251_v27  ;;  %v709_v40 = vshrl.u32 %v251_v27, 5  ;;  %v718_v58 = vsub.s32 32, %v45_v44  ;;  %v48_v4 = vshll.u32 %v615_v46, %v45_v44 }
  0x11   :  { %v51_v7 = vshll.u32 %v616_v48, %v45_v44  ;;  %v57_v10 = vshll.u32 %v612_v36, %v45_v44  ;;  %v740_v12 = vsub.s32 32, %v149_v59  ;;  %v60_v20 = vshll.u32 %v613_v38, %v45_v44 }
  0x12   :  { %v703_v33 = vsub.s32 32, %v253_v30  ;;  %v265_v37 = vshll.u32 %v612_v36, %v253_v30  ;;  %v268_v41 = vshll.u32 %v613_v38, %v253_v30  ;;  %v256_v47 = vshll.u32 %v615_v46, %v253_v30 }
  0x13   :  { %v259_v49 = vshll.u32 %v616_v48, %v253_v30  ;;  %v262_v54 = vshll.u32 %v617_v52, %v253_v30  ;;  %vm274_vm5 = vcmp.lt.s32.totalorder %v709_v40, 4  ;;  %vm271_vm6 = vcmp.lt.s32.totalorder %v709_v40, 1 }
  0x14   :  { %v266_v39 = vshrl.u32 %v613_v38, %v703_v33  ;;  %v269_v43 = vshrl.u32 %v614_v42, %v703_v33  ;;  %v257_v51 = vshrl.u32 %v616_v48, %v703_v33  ;;  %v260_v53 = vshrl.u32 %v617_v52, %v703_v33 }
  0x15   :  { %v263_v55 = vshrl.u32 %v612_v36, %v703_v33  ;;  %vm273_vm7 = vcmp.lt.s32.totalorder %v709_v40, 3  ;;  %v49_v5 = vshrl.u32 %v616_v48, %v718_v58  ;;  %v52_v9 = vshrl.u32 %v617_v52, %v718_v58 }
  0x16   :  { %v267_v56 = vor.u32 %v266_v39, %v265_v37  ;;  %v270_v57 = vor.u32 %v269_v43, %v268_v41  ;;  %v720_v60 = vor.u32 %v257_v51, %v256_v47  ;;  %v722_v61 = vor.u32 %v260_v53, %v259_v49 }
  0x17   :  { %v724_v62 = vor.u32 %v263_v55, %v262_v54  ;;  %v58_v11 = vshrl.u32 %v613_v38, %v718_v58  ;;  %vm272_vm8 = vcmp.lt.s32.totalorder %v709_v40, 2  ;;  %v61_v22 = vshrl.u32 %v614_v42, %v718_v58 }
  0x18   :  { %v280_v0 = vsel %vm274_vm5, %v267_v56, 920167782  ;;  %v284_v3 = vsel %vm274_vm5, %v270_v57, 1326507024  ;;  %v279_v13 = vsel %vm271_vm6, %v720_v60, %v722_v61  ;;  %v761_v24 = vor.u32 %v49_v5, %v48_v4 }
  0x19   :  { %v283_v14 = vsel %vm271_vm6, %v722_v61, %v724_v62  ;;  %v281_v17 = vsel %vm273_vm7, %v724_v62, %v280_v0  ;;  %v285_v23 = vsel %vm273_vm7, %v267_v56, %v284_v3  ;;  %v54_v25 = vshll.u32 %v617_v52, %v45_v44 }
  0x1a   :  { %v55_v26 = vshrl.u32 %v612_v36, %v718_v58  ;;  %v765_v27 = vor.u32 %v52_v9, %v51_v7  ;;  %v59_v28 = vor.u32 %v58_v11, %v57_v10  ;;  %v161_v29 = vshll.u32 %v612_v36, %v149_v59 }
  0x1b   :  { %v162_v30 = vshrl.u32 %v613_v38, %v740_v12  ;;  %v164_v35 = vshll.u32 %v613_v38, %v149_v59  ;;  %v165_v37 = vshrl.u32 %v614_v42, %v740_v12  ;;  %v62_v39 = vor.u32 %v61_v22, %v60_v20 }
  0x1c   :  { %vm66_vm9 = vcmp.lt.s32.totalorder %v751_v16, 4  ;;  %v152_v41 = vshll.u32 %v615_v46, %v149_v59  ;;  %v155_v43 = vshll.u32 %v616_v48, %v149_v59  ;;  %v153_v44 = vshrl.u32 %v616_v48, %v740_v12 }
  0x1d   :  { %v156_v45 = vshrl.u32 %v617_v52, %v740_v12  ;;  %v158_v47 = vshll.u32 %v617_v52, %v149_v59  ;;  %v159_v49 = vshrl.u32 %v612_v36, %v740_v12  ;;  %v56_v51 = vor.u32 %v55_v26, %v54_v25 }
  0x1e   :  { %vm63_vm10 = vcmp.lt.s32.totalorder %v751_v16, 1  ;;  %vm65_vm11 = vcmp.lt.s32.totalorder %v751_v16, 3  ;;  %v163_v38 = vor.u32 %v162_v30, %v161_v29  ;;  %v72_v42 = vsel %vm66_vm9, %v59_v28, 920167782 }
  0x1f   :  { %v142_v50 = vand.u32 8388607, %v135_v32  ;;  %v166_v53 = vor.u32 %v165_v37, %v164_v35  ;;  %vm170_vm12 = vcmp.lt.s32.totalorder %v770_v34, 4  ;;  %v282_v48 = vsel %vm272_vm8, %v279_v13, %v281_v17 }
  0x20   :  { %v39_v52 = vor.u32 8388608, %v38_v19  ;;  %vm64_vm13 = vcmp.lt.s32.totalorder %v751_v16, 2  ;;  %v76_v36 = vsel %vm66_vm9, %v62_v39, 1326507024  ;;  %v71_v54 = vsel %vm63_vm10, %v761_v24, %v765_v27 }
  0x21   :  { %v154_v55 = vor.u32 %v153_v44, %v152_v41  ;;  %v157_v56 = vor.u32 %v156_v45, %v155_v43  ;;  %v160_v57 = vor.u32 %v159_v49, %v158_v47  ;;  %v73_v59 = vsel %vm65_vm11, %v56_v51, %v72_v42 }
  0x22   :  { %vm167_vm14 = vcmp.lt.s32.totalorder %v770_v34, 1  ;;  %vm169_vm15 = vcmp.lt.s32.totalorder %v770_v34, 3  ;;  %v176_v0 = vsel %vm170_vm12, %v163_v38, 920167782  ;;  %v75_v3 = vsel %vm63_vm10, %v765_v27, %v56_v51 }
  0x23   :  { %v77_v4 = vsel %vm65_vm11, %v59_v28, %v76_v36  ;;  %v143_v5 = vor.u32 8388608, %v142_v50  ;;  %v180_v7 = vsel %vm170_vm12, %v166_v53, 1326507024  ;;  %v286_v9 = vsel %vm272_vm8, %v283_v14, %v285_v23 }
  0x24   :  { %v811_v10 = vmul.u32.u64.low %v726_v63, %v282_v48  ;;  %v812_v11 = vmul.u32.u64.high %v726_v63, %v282_v48, %v811_v10  ;;  %v79_v13 = vshll.u32 %v39_v52, 8  ;;  %v74_v17 = vsel %vm64_vm13, %v71_v54, %v73_v59 }
  0x25   :  { %vm168_vm0 = vcmp.lt.s32.totalorder %v770_v34, 2  ;;  %v175_v19 = vsel %vm167_vm14, %v154_v55, %v157_v56  ;;  %v177_v20 = vsel %vm169_vm15, %v160_v57, %v176_v0  ;;  %v78_v14 = vsel %vm64_vm13, %v75_v3, %v77_v4 }
  0x26   :  { %v179_v22 = vsel %vm167_vm14, %v157_v56, %v160_v57  ;;  %v181_v23 = vsel %vm169_vm15, %v163_v38, %v180_v7  ;;  %v255_v25 = vshrl.u32 %v615_v46, %v703_v33  ;;  %v183_v29 = vshll.u32 %v143_v5, 8 }
  0x27   :  { %v831_v26 = vmul.u32.u64.low %v726_v63, %v286_v9  ;;  %v832_v28 = vmul.u32.u64.high %v726_v63, %v286_v9, %v831_v26  ;;  %v276_v30 = vsel %vm274_vm5, %v724_v62, 2102212464  ;;  %v178_v39 = vsel %vm168_vm0, %v175_v19, %v177_v20 }
  0x28   :  { %v837_v35 = vmul.u32.u64.low %v79_v13, %v74_v17  ;;  %v838_v37 = vmul.u32.u64.high %v79_v13, %v74_v17, %v837_v35  ;;  %v47_v41 = vshrl.u32 %v615_v46, %v718_v58  ;;  %v182_v44 = vsel %vm168_vm0, %v179_v22, %v181_v23 }
  0x29   :  { %v845_v33 = vmul.u32.u64.low %v79_v13, %v78_v14  ;;  %v846_v43 = vmul.u32.u64.high %v79_v13, %v78_v14, %v845_v33  ;;  %v68_v45 = vsel %vm66_vm9, %v56_v51, 2102212464  ;;  %v275_v62 = vsel %vm271_vm6, %v255_v25, %v720_v60 }
  0x2a   :  { %v277_v47 = vsel %vm273_vm7, %v722_v61, %v276_v30  ;;  %v858_v49 = vmul.u32.u64.low %v183_v29, %v178_v39  ;;  %v859_v38 = vmul.u32.u64.high %v183_v29, %v178_v39, %v858_v49  ;;  %v151_v58 = vshrl.u32 %v615_v46, %v740_v12 }
  0x2b   :  { %v864_v42 = vmul.u32.u64.low %v183_v29, %v182_v44  ;;  %v865_v50 = vmul.u32.u64.high %v183_v29, %v182_v44, %v864_v42  ;;  %v67_v51 = vsel %vm63_vm10, %v47_v41, %v761_v24  ;;  %v69_v60 = vsel %vm65_vm11, %v765_v27, %v68_v45 }
  0x2c   :  { %v172_v61 = vsel %vm170_vm12, %v160_v57, 2102212464  ;;  %v278_v53 = vsel %vm272_vm8, %v275_v62, %v277_v47  ;;  %v297_v48 = vadd.s32 1, %v812_v11  ;;  %vm296_vm1 = vc.u32 %v832_v28, %v811_v10 }
  0x2d   :  { %v70_v46 = vsel %vm64_vm13, %v67_v51, %v69_v60  ;;  %v89_v12 = vadd.s32 1, %v838_v37  ;;  %v171_v24 = vsel %vm167_vm14, %v151_v58, %v154_v55  ;;  %v173_v27 = vsel %vm169_vm15, %v157_v56, %v172_v61 }
  0x2e   :  { %v294_v52 = vmul.u32 %v726_v63, %v278_v53  ;;  %vm88_vm2 = vc.u32 %v846_v43, %v837_v35  ;;  %v298_v40 = vsel %vm296_vm1, %v297_v48, %v812_v11  ;;  %v86_v36 = vmul.u32 %v79_v13, %v70_v46 }
  0x2f   :  { %v174_v16 = vsel %vm168_vm0, %v171_v24, %v173_v27  ;;  %v193_v54 = vadd.s32 1, %v859_v38  ;;  %v90_v57 = vsel %vm88_vm2, %v89_v12, %v838_v37  ;;  %vm192_vm3 = vc.u32 %v865_v50, %v858_v49 }
  0x30   :  { %v299_v55 = vadd.s32 %v298_v40, %v294_v52  ;;  %v190_v56 = vmul.u32 %v183_v29, %v174_v16  ;;  %v91_v59 = vadd.s32 %v90_v57, %v86_v36  ;;  %v295_v51 = vadd.s32 %v811_v10, %v832_v28 }
  0x31   :  { %v194_v63 = vsel %vm192_vm3, %v193_v54, %v859_v38  ;;  %v87_v48 = vadd.s32 %v837_v35, %v846_v43  ;;  %v191_v40 = vadd.s32 %v858_v49, %v865_v50  ;;  %vm241_vm7 = vcmp.lt.s32.totalorder %v687_v15, 0 }
  0x32   :  { %v300_v0 = vadd.s32 536870912, %v299_v55  ;;  %v195_v3 = vadd.s32 %v194_v63, %v190_v56  ;;  %v92_v4 = vadd.s32 536870912, %v91_v59  ;;  %vm33_vm8 = vcmp.lt.s32.totalorder %v693_v18, 0 }
  0x33   :  { %vm917_vm9 = vcmp.le.f32.partialorder %v239_v31, 0.7853982  ;;  %vm925_vm10 = vcmp.le.f32.partialorder %v31_v1, 0.7853982  ;;  %vm137_vm11 = vcmp.lt.s32.totalorder %v699_v21, 0 }
  0x34   :  { %v898_v5 = vshrl.u32 %v300_v0, 30  ;;  %v196_v7 = vadd.s32 536870912, %v195_v3  ;;  %v900_v34 = vshrl.u32 %v92_v4, 30  ;;  %vm942_vm12 = vcmp.le.f32.partialorder %v135_v32, 0.7853982 }
  0x36   :  { %v302_v9 = vshll.u32 %v898_v5, 30  ;;  %v903_v11 = vshrl.u32 %v196_v7, 30  ;;  %v94_v13 = vshll.u32 %v900_v34, 30 }
  0x38   :  { %v303_v17 = vsub.s32 %v299_v55, %v302_v9  ;;  %v198_v19 = vshll.u32 %v903_v11, 30  ;;  %v95_v20 = vsub.s32 %v91_v59, %v94_v13 }
  0x3a   :  { %v305_v14 = vsub.s32 0, %v303_v17  ;;  %v199_v22 = vsub.s32 %v195_v3, %v198_v19  ;;  %v97_v23 = vsub.s32 0, %v95_v20 }
  0x3c   :  { %v545_v25 = vmin.u32 %v305_v14, %v303_v17  ;;  %v201_v26 = vsub.s32 0, %v199_v22  ;;  %v537_v29 = vmin.u32 %v97_v23, %v95_v20 }
  0x3e   :  { %v307_v30 = vclz %v545_v25  ;;  %v541_v37 = vmin.u32 %v201_v26, %v199_v22  ;;  %v99_v39 = vclz %v537_v29 }
  0x40   :  { %v546_v41 = vadd.s32 4294967294, %v307_v30  ;;  %v203_v33 = vclz %v541_v37  ;;  %v538_v44 = vadd.s32 4294967294, %v99_v39  ;;  %v325_v37 = vsub.s32 4, %v898_v5 }
  0x41   :  { %v117_v39 = vsub.s32 4, %v900_v34 }
  0x42   :  { %vm547_vm4 = vcmp.lt.s32.totalorder %v546_v41, 0  ;;  %v542_v45 = vadd.s32 4294967294, %v203_v33  ;;  %vm539_vm5 = vcmp.lt.s32.totalorder %v538_v44, 0 }
  0x43   :  { %v310_v62 = vsel %vm547_vm4, 0, %v546_v41  ;;  %v102_v47 = vsel %vm539_vm5, 0, %v538_v44  ;;  %v221_v44 = vsub.s32 4, %v903_v11  ;;  %v118_v32 = vsel %vm33_vm8, %v117_v39, %v900_v34 }
  0x44   :  { %vm543_vm6 = vcmp.lt.s32.totalorder %v542_v45, 0  ;;  %v315_v38 = vsub.s32 4294967266, %v310_v62  ;;  %v107_v58 = vsub.s32 4294967266, %v102_v47  ;;  %v311_v60 = vsub.s32 32, %v310_v62 }
  0x45   :  { %v206_v42 = vsel %vm543_vm6, 0, %v542_v45  ;;  %v103_v46 = vsub.s32 32, %v102_v47  ;;  %v312_v24 = vshll.u32 %v303_v17, %v310_v62  ;;  %v104_v54 = vshll.u32 %v95_v20, %v102_v47 }
  0x46   :  { %v316_v61 = vadd.s32 127, %v315_v38  ;;  %v211_v53 = vsub.s32 4294967266, %v206_v42  ;;  %v108_v12 = vadd.s32 127, %v107_v58  ;;  %v313_v27 = vshrl.u32 %v295_v51, %v311_v60 }
  0x47   :  { %v207_v36 = vsub.s32 32, %v206_v42  ;;  %v105_v57 = vshrl.u32 %v87_v48, %v103_v46  ;;  %v208_v56 = vshll.u32 %v199_v22, %v206_v42  ;;  %v326_v62 = vsel %vm241_vm7, %v325_v37, %v898_v5  ;;  %v516_v37 = vld [vmem:[%s999_s1] sm:$0xff] }
  0x48   :  { %v317_v52 = vshll.u32 %v316_v61, 23  ;;  %v212_v16 = vadd.s32 127, %v211_v53  ;;  %v109_v55 = vshll.u32 %v108_v12, 23  ;;  %v314_v10 = vor.u32 %v313_v27, %v312_v24 }
  0x49   :  { %v209_v59 = vshrl.u32 %v191_v40, %v207_v36  ;;  %v106_v0 = vor.u32 %v105_v57, %v104_v54  ;;  %v222_v47 = vsel %vm137_vm11, %v221_v44, %v903_v11  ;;  %v328_v38 = vsel %vm917_vm9, 0, %v326_v62 }
  0x4a   :  { %v318_v28 = vor.u32 4788187, %v317_v52  ;;  %v213_v63 = vshll.u32 %v212_v16, 23  ;;  %v110_v35 = vor.u32 4788187, %v109_v55  ;;  %v321_v3 = vcvt.s32.f32 %v314_v10 }
  0x4b   :  { %v210_v4 = vor.u32 %v209_v59, %v208_v56  ;;  %v113_v13 = vcvt.s32.f32 %v106_v0  ;;  %v120_v58 = vsel %vm925_vm10, 0, %v118_v32  ;;  %v224_v42 = vsel %vm942_vm12, 0, %v222_v47 }
  0x4c   :  { %v319_v43 = vand.u32 2147483647, %v318_v28  ;;  %v214_v7 = vor.u32 4788187, %v213_v63  ;;  %v111_v9 = vand.u32 2147483647, %v110_v35  ;;  %vm331_vm5 = vweird.f32 %v687_v15 }
  0x4d   :  { %v217_v50 = vcvt.s32.f32 %v210_v4  ;;  %v332_v51 = vadd.s32 3, %v328_v38  ;;  %v124_v5 = vadd.s32 3, %v120_v58  ;;  %v228_v61 = vadd.s32 3, %v224_v42 }
  0x4e   :  { %v322_v17 = vmul.f32 %v321_v3, %v319_v43  ;;  %v215_v49 = vand.u32 2147483647, %v214_v7  ;;  %v114_v19 = vmul.f32 %v113_v13, %v111_v9  ;;  %v498_v34 = vmul.f32 100.0, %v663_v6 }
  0x4f   :  { %v333_v46 = vand.u32 3, %v332_v51  ;;  %v125_v12 = vand.u32 3, %v124_v5  ;;  %v496_v24 = vmul.f32 100.0, %v671_v8  ;;  %v229_v27 = vand.u32 3, %v228_v61 }
  0x50   :  { %v323_v20 = vxor.u32 2147483648, %v322_v17  ;;  %v218_v14 = vmul.f32 %v217_v50, %v215_v49  ;;  %v115_v23 = vxor.u32 2147483648, %v114_v19  ;;  %v497_v40 = vmul.f32 100.0, %v654_v2 }
  0x51   :  { %vm335_vm13 = vcmp.eq.s32.totalorder %v333_v46, 0  ;;  %vm338_vm14 = vcmp.eq.s32.totalorder %v333_v46, 2  ;;  %vm127_vm15 = vcmp.eq.s32.totalorder %v125_v12, 0  ;;  %vm130_vm0 = vcmp.eq.s32.totalorder %v125_v12, 2 }
  0x52   :  { %v324_v25 = vsel %vm241_vm7, %v323_v20, %v322_v17  ;;  %v219_v26 = vxor.u32 2147483648, %v218_v14  ;;  %v116_v30 = vsel %vm33_vm8, %v115_v23, %v114_v19  ;;  %vm334_vm1 = vcmp.lt.s32.totalorder %v333_v46, 2 }
  0x53   :  { %v327_v31 = vsel %vm917_vm9, %v687_v15, %v324_v25  ;;  %v119_v1 = vsel %vm925_vm10, %v693_v18, %v116_v30  ;;  %vm231_vm2 = vcmp.eq.s32.totalorder %v229_v27, 0  ;;  %vm126_vm3 = vcmp.lt.s32.totalorder %v125_v12, 2 }
  0x54   :  { %v220_v33 = vsel %vm137_vm11, %v219_v26, %v218_v14  ;;  %590 = vcosq.f32 %v327_v31  ;;  %vm234_vm4 = vcmp.eq.s32.totalorder %v229_v27, 2  ;;  %vm123_vm6 = vweird.f32 %v693_v18 }
  0x55   :  { %592 = vsinq.f32 %v327_v31  ;;  %v223_v45 = vsel %vm942_vm12, %v699_v21, %v220_v33  ;;  %vm230_vm7 = vcmp.lt.s32.totalorder %v229_v27, 2  ;;  %vm227_vm8 = vweird.f32 %v699_v21  ;;  %v518_v21 = vld [vmem:[%s999_s1 + $0x10] sm:$0xff]  ;;  %v517_v33 = vld [vmem:[%s999_s1 + $0x8] sm:$0xff] }
  0x56   :  { %594 = vcosq.f32 %v119_v1 }
  0x57   :  { %596 = vsinq.f32 %v119_v1 }
  0x58   :  { %598 = vcosq.f32 %v223_v45 }
  0x59   :  { %600 = vsinq.f32 %v223_v45 }
  0x5a   :  { %602 = vtanh.f32 %v498_v34 }
  0x5b   :  { %604 = vtanh.f32 %v496_v24 }
  0x5c   :  { %606 = vtanh.f32 %v497_v40 }
  0x5e   :  { %v591_v60 = vpop.eup %590 }
  0x5f   :  { %v593_v53 = vpop.eup %592  ;;  %v339_v54 = vxor.u32 2147483648, %v591_v60 }
  0x60   :  { %v595_v48 = vpop.eup %594  ;;  %v336_v16 = vxor.u32 2147483648, %v593_v53 }
  0x61   :  { %v597_v11 = vpop.eup %596  ;;  %v131_v55 = vxor.u32 2147483648, %v595_v48  ;;  %v340_v28 = vsel %vm338_vm14, %v339_v54, %v593_v53 }
  0x62   :  { %v599_v52 = vpop.eup %598  ;;  %v128_v57 = vxor.u32 2147483648, %v597_v11  ;;  %v337_v10 = vsel %vm335_vm13, %v591_v60, %v336_v16 }
  0x63   :  { %v601_v36 = vpop.eup %600  ;;  %v235_v8 = vxor.u32 2147483648, %v599_v52  ;;  %v132_v56 = vsel %vm130_vm0, %v131_v55, %v597_v11  ;;  %v341_v59 = vsel %vm334_vm1, %v337_v10, %v340_v28 }
  0x64   :  { %v232_v6 = vxor.u32 2147483648, %v601_v36  ;;  %v129_v2 = vsel %vm127_vm15, %v595_v48, %v128_v57  ;;  %v603_v3 = vpop.eup %602  ;;  %v342_v4 = vsel %vm331_vm5, nan, %v341_v59 }
  0x65   :  { %v133_v63 = vsel %vm126_vm3, %v129_v2, %v132_v56  ;;  %v236_v35 = vsel %vm234_vm4, %v235_v8, %v601_v36  ;;  %v605_v13 = vpop.eup %604 }
  0x66   :  { %v233_v0 = vsel %vm231_vm2, %v599_v52, %v232_v6  ;;  %v134_v7 = vsel %vm123_vm6, nan, %v133_v63  ;;  %v607_v15 = vpop.eup %606 }
  0x67   :  { %v237_v9 = vsel %vm230_vm7, %v233_v0, %v236_v35 }
  0x68   :  { %v238_v50 = vsel %vm227_vm8, nan, %v237_v9 }
  0x83   :  { %v346_v43 = vpop.permute.xlu0 %345 }
  0x84   :  { %v350_v17 = vmul.f32 %v346_v43, %v342_v4  ;;  %v348_v49 = vmul.f32 %v346_v43, %v134_v7  ;;  %v349_v14 = vmul.f32 %v346_v43, %v238_v50 }
  0x88   :  { %v505_v19 = vpop.permute.xlu0 %504 }
  0x89   :  { %v507_v23 = vmul.f32 %v605_v13, %v505_v19  ;;  %v509_v22 = vmul.f32 %v603_v3, %v505_v19  ;;  %v508_v31 = vmul.f32 %v607_v15, %v505_v19 }
  0xdb   :  { %v492_v20 = vpop.f32.mrb[0].mxu1  ;;  %v421_v18 = vpop.f32.mrb[0].mxu0 }
  0xdc   :  { %v493_v25 = vadd.f32 %v492_v20, %v350_v17  ;;  %v422_v26 = vadd.f32 %v421_v18, %v348_v49  ;;  %v423_v29 = vpop.f32.mrb[1].mxu0  ;;  %v559_v30 = vpop.f32.mrb[1].mxu1 }
  0xdd   :  { %v424_v39 = vadd.f32 %v423_v29, %v349_v14 }
  0xde   :  { %v512_v1 = vsub.f32 %v493_v25, %v509_v22  ;;  %v510_v41 = vsub.f32 %v422_v26, %v507_v23 }
  0xdf   :  { %v511_v44 = vsub.f32 %v424_v39, %v508_v31 }
  0xe0   :  { %515 = vst [vmem:[%s1000_s4 + $0x10] sm:$0xff] %v512_v1  ;;  %v521_v45 = vsub.f32 %v512_v1, %v518_v21  ;;  %513 = vst [vmem:[%s1000_s4] sm:$0xff] %v510_v41  ;;  %v519_v62 = vsub.f32 %v510_v41, %v516_v37 }
  0xe1   :  { %514 = vst [vmem:[%s1000_s4 + $0x8] sm:$0xff] %v511_v44  ;;  %v520_v32 = vsub.f32 %v511_v44, %v517_v33 }
  0xe2   :  { %v524_v47 = vmul.f32 %v521_v45, %v521_v45  ;;  %v522_v38 = vmul.f32 %v519_v62, %v519_v62 }
  0xe3   :  { %v523_v58 = vmul.f32 %v520_v32, %v520_v32 }
  0xe4   :  { %527 = vst [vmem:[%s1001_s5 + $0x10] sm:$0xff] %v524_v47  ;;  %525 = vst [vmem:[%s1001_s5] sm:$0xff] %v522_v38 }
  0xe5   :  { %526 = vst [vmem:[%s1001_s5 + $0x8] sm:$0xff] %v523_v58 }

</bundles_post_ra>
